<compile_context>
chip_gen: v7x
topology: tpu7x:2x2x1
jax: 0.10.0
libtpu: 0.0.40
codegen_flags: <defaults>
</compile_context>

<pallas_src>
import jax
import jax.numpy as jnp
from jax import lax
from jax.experimental import pallas as pl
from jax.experimental.pallas import tpu as pltpu


def _round_up(x, m):
    return ((x + m - 1) // m) * m


def _vmem_capacity_bytes():
    """Per-TensorCore VMEM capacity; conservative fallback if unknown."""
    try:
        info = pltpu.get_tpu_info()
        cap = getattr(info, "vmem_capacity_bytes", None)
        if cap:
            return int(cap)
    except Exception:
        pass
    return 64 * 1024 * 1024  # v7x per-TC size: safe lower bound everywhere


def _make_baseline_kernel(D, S, T_seg):
    """Kernel closure over static layout parameters.

    Refs:
      w_ref:    (F,)         SMEM  f32, F = 2*D + 4, read as scalars
      obs_ref:  (D, BS, tT)  VMEM  observations (time on the lane axis)
      mask_ref: (BS, tT)     VMEM
      out_ref:  (BS, tT)     VMEM  f32
    BS = B * S; lane u of sublane-row r = b*S + s holds original time step
    t = s*T_seg + program_id(0)*tT + u of batch entry b.
    """

    def kernel(w_ref, obs_ref, mask_ref, out_ref):
        BS, tT = mask_ref.shape
        j = pl.program_id(0)

        mask = mask_ref[...].astype(jnp.float32)                       # (BS, tT)

        # time_step = t * mask / 100 (t reconstructed from grid/lane/sublane).
        t_idx = j * tT + lax.broadcasted_iota(jnp.int32, (BS, tT), 1)
        if S > 1:
            row = lax.broadcasted_iota(jnp.int32, (BS, tT), 0)
            t_idx = t_idx + (row % S) * T_seg
        ts = t_idx.astype(jnp.float32) * mask * 0.01                   # (BS, tT)

        # ones-feature term + time polynomial (Horner; mask is inside ts, so
        # the mask^2 / mask^3 factors of ts^2, ts^3 are preserved exactly).
        acc = mask * w_ref[2 * D + 3]
        acc = acc + ts * (w_ref[2 * D] + ts * (w_ref[2 * D + 1] + ts * w_ref[2 * D + 2]))

        # Observation terms: w[d]*obs_d + w[D+d]*obs_d^2 as lane-parallel FMAs.
        for d in range(D):
            o = obs_ref[d].astype(jnp.float32)                         # (BS, tT)
            acc = acc + o * (w_ref[d] + o * w_ref[D + d])

        out_ref[...] = acc

    return kernel


def linear_feature_baseline_forward(observations, mask, weight, *, lane_tile=None):
    """values = mv(features.view(-1, F), weight).view(T, B)

    observations: (T, B, D) float32/bfloat16
    mask:         (T, B)    float32/bfloat16 (episode validity mask)
    weight:       (F,) with F = 2*D + 4
    returns:      (T, B) float32
    """
    T, B, D = observations.shape
    F = 2 * D + 4
    assert weight.shape == (F,)

    # Single HBM transpose to the lane-dense layout (time last). Keep original
    # dtype (no upcast before the kernel) to minimize transpose traffic.
    obs_l = jnp.transpose(observations, (2, 1, 0))        # (D, B, T)
    mask_l = jnp.transpose(mask, (1, 0))                  # (B, T)

    # Sublane fold: when B < 8, split T into S segments stacked on sublanes so
    # each vreg's 8 sublanes hold real data. This is a metadata-only reshape.
    S = 1
    if B < 8:
        S = 8 // B                       # power of two for B in [1, 7]
        while S > 1 and T % S != 0:
            S //= 2
    T_seg = T // S
    BS = B * S
    if S > 1:
        obs_l = obs_l.reshape(D, BS, T_seg)
        mask_l = mask_l.reshape(BS, T_seg)

    # Generation-aware tile sizing. Footprint per lane column: double-buffered
    # (obs + mask + out) blocks plus ~6 f32 in-kernel temporaries (ts, mask,
    # per-d upcast, acc, iotas), with sublanes padded to 8.
    isz = jnp.dtype(observations.dtype).itemsize
    msz = jnp.dtype(mask.dtype).itemsize
    Bs_pad = _round_up(BS, 8)
    per_lane = 2 * (D * Bs_pad * isz + Bs_pad * msz + Bs_pad * 4) + 6 * Bs_pad * 4

    vmem_cap = _vmem_capacity_bytes()              # 64 MiB (v7x) / 128 MiB (v5e/v6e)
    budget = vmem_cap // 4                         # 16 MiB / 32 MiB block budget
    vmem_limit = min((vmem_cap * 3) // 4, 96 * 1024 * 1024)

    max_lanes = max(128, (budget // per_lane) // 128 * 128)
    tT = min(max_lanes, _round_up(T_seg, 128))
    if lane_tile is not None:
        tT = min(tT, max(128, _round_up(lane_tile, 128)))
    # Keep >= 4 grid steps (megacore sharding on v7x + pipeline overlap) as
    # long as blocks stay >= 512 lanes.
    if T_seg >= 4 * 512:
        tT = min(tT, max(512, _round_up(pl.cdiv(T_seg, 4), 128)))

    grid = (pl.cdiv(T_seg, tT),)   # ragged final block handled by Pallas (no jnp.pad)

    out = pl.pallas_call(
        _make_baseline_kernel(D, S, T_seg),
        out_shape=jax.ShapeDtypeStruct((BS, T_seg), jnp.float32),
        grid_spec=pltpu.PrefetchScalarGridSpec(
            num_scalar_prefetch=0,
            grid=grid,
            in_specs=[
                # F scalars -> SMEM; read one-by-one on the scalar path.
                pl.BlockSpec(memory_space=pltpu.MemorySpace.SMEM),
                pl.BlockSpec((D, BS, tT), lambda j: (0, 0, j)),
                pl.BlockSpec((BS, tT), lambda j: (0, j)),
            ],
            out_specs=pl.BlockSpec((BS, tT), lambda j: (0, j)),
        ),
        compiler_params=pltpu.CompilerParams(
            dimension_semantics=("parallel",),
            vmem_limit_bytes=int(vmem_limit),
        ),
    )(weight.astype(jnp.float32), obs_l, mask_l)

    # (BS, T_seg) -> (B, T) is a metadata-only merge of the folded axis; the
    # final transpose restores the module's (T, B) output convention.
    return out.reshape(B, T).T


def _reference_forward(observations, mask, weight):
    T, B, D = observations.shape
    obs = observations.astype(jnp.float32)
    m = mask.astype(jnp.float32)
    ones = m[..., None]
    ts = (jnp.arange(T, dtype=jnp.float32).reshape(-1, 1, 1) * ones) / 100.0
    feats = jnp.concatenate([obs, obs ** 2, ts, ts ** 2, ts ** 3, ones], axis=2)
    F = 2 * D + 4
    return (feats.reshape(-1, F) @ weight.astype(jnp.float32)).reshape(T, B)


if __name__ == "__main__":
    key = jax.random.PRNGKey(0)
    k_obs, k_w, k_obs2, k_w2, k_obs3, k_w3 = jax.random.split(key, 6)

    # Case 1: small shapes consistent with the module (seq=8, batch=2, D=4).
    # Exercises the sublane fold (S=4) and a single ragged block (T_seg=2).
    T, B, D = 8, 2, 4
    F = 2 * D + 4                      # feature_size = 12
    observations = jax.random.normal(k_obs, (T, B, D), dtype=jnp.float32)
    mask = jnp.ones((T, B), dtype=jnp.float32).at[6:, 1].set(0.0)
    weight = 0.1 * jax.random.normal(k_w, (F,), dtype=jnp.float32)

    values = jax.block_until_ready(
        linear_feature_baseline_forward(observations, mask, weight))
    ref = _reference_forward(observations, mask, weight)
    assert values.shape == (T, B)
    assert jnp.allclose(values, ref, atol=1e-5, rtol=1e-5)

    # Case 2: multi-block grid with a ragged final block (T=300, tT=128 ->
    # grid=3, tail of 44 lanes), no fold (B=5), arbitrary binary mask.
    T2, B2, D2 = 300, 5, 6
    F2 = 2 * D2 + 4
    observations2 = jax.random.normal(k_obs2, (T2, B2, D2), dtype=jnp.float32)
    mask2 = (jax.random.uniform(jax.random.PRNGKey(1), (T2, B2)) > 0.3).astype(jnp.float32)
    weight2 = 0.1 * jax.random.normal(k_w2, (F2,), dtype=jnp.float32)

    values2 = jax.block_until_ready(
        linear_feature_baseline_forward(observations2, mask2, weight2, lane_tile=128))
    ref2 = _reference_forward(observations2, mask2, weight2)
    assert values2.shape == (T2, B2)
    assert jnp.allclose(values2, ref2, atol=1e-5, rtol=1e-5)

    # Case 3: bf16 inputs, sublane fold (S=4, T_seg=250) + multi-block ragged
    # grid (tT=128 -> grid=2, tail of 122 lanes).
    T3, B3, D3 = 1000, 2, 3
    F3 = 2 * D3 + 4
    observations3 = jax.random.normal(k_obs3, (T3, B3, D3), dtype=jnp.bfloat16)
    mask3 = (jax.random.uniform(jax.random.PRNGKey(2), (T3, B3)) > 0.2).astype(jnp.bfloat16)
    weight3 = 0.1 * jax.random.normal(k_w3, (F3,), dtype=jnp.float32)

    values3 = jax.block_until_ready(
        linear_feature_baseline_forward(observations3, mask3, weight3, lane_tile=128))
    ref3 = _reference_forward(observations3, mask3, weight3)
    assert values3.shape == (T3, B3)
    assert jnp.allclose(values3, ref3, atol=1e-4, rtol=1e-4)

    print("KERNEL_OK")
</pallas_src>

<mosaic_0001>
module attributes {stable_mosaic.version = 11 : i64} {
  func.func @kernel(%arg0: i32, %arg1: memref<12xf32, #tpu.memory_space<smem>>, %arg2: memref<4x8x128xf32, #tpu.memory_space<vmem>>, %arg3: memref<8x128xf32, #tpu.memory_space<vmem>>, %arg4: memref<8x128xf32, #tpu.memory_space<vmem>>) attributes {dimension_semantics = [#tpu.dimension_semantics<parallel>], iteration_bounds = array<i64: 1>, scalar_prefetch = 0 : i64, scratch_operands = 0 : i64, tpu.core_type = #tpu.core_type<tc>, window_params = [{transform_indices = @transform_0, window_bounds = array<i64: 12>}, {transform_indices = @transform_1, window_bounds = array<i64: 4, 8, 128>}, {transform_indices = @transform_2, window_bounds = array<i64: 8, 128>}, {transform_indices = @transform_3, window_bounds = array<i64: 8, 128>}]} {
    %c0 = arith.constant 0 : index
    %c0_0 = arith.constant 0 : index
    %0 = vector.load %arg3[%c0, %c0_0] : memref<8x128xf32, #tpu.memory_space<vmem>>, vector<8x128xf32>
    %c128_i32 = arith.constant 128 : i32
    %1 = arith.muli %arg0, %c128_i32 : i32
    %2 = tpu.iota {dimensions = array<i32: 1>} : vector<8x128xi32>
    %3 = vector.broadcast %1 : i32 to vector<8x128xi32>
    %4 = arith.addi %3, %2 : vector<8x128xi32>
    %5 = tpu.iota {dimensions = array<i32: 0>} : vector<8x128xi32>
    %c4_i32 = arith.constant 4 : i32
    %c0_i32 = arith.constant 0 : i32
    %6 = arith.cmpi eq, %c4_i32, %c0_i32 : i32
    %c1_i32 = arith.constant 1 : i32
    %7 = arith.select %6, %c1_i32, %c4_i32 : i32
    %8 = vector.broadcast %7 : i32 to vector<8x128xi32>
    %9 = arith.remsi %5, %8 : vector<8x128xi32>
    %c0_i32_1 = arith.constant 0 : i32
    %10 = vector.broadcast %c0_i32_1 : i32 to vector<8x128xi32>
    %11 = arith.cmpi ne, %9, %10 : vector<8x128xi32>
    %c0_i32_2 = arith.constant 0 : i32
    %12 = vector.broadcast %c0_i32_2 : i32 to vector<8x128xi32>
    %13 = arith.cmpi slt, %9, %12 : vector<8x128xi32>
    %c0_i32_3 = arith.constant 0 : i32
    %14 = arith.cmpi slt, %7, %c0_i32_3 : i32
    %15 = vector.broadcast %14 : i1 to vector<8x128xi1>
    %16 = vector.broadcast %15 : vector<8x128xi1> to vector<8x128xi1>
    %17 = arith.xori %13, %16 : vector<8x128xi1>
    %18 = arith.andi %17, %11 : vector<8x128xi1>
    %19 = vector.broadcast %7 : i32 to vector<8x128xi32>
    %20 = arith.addi %9, %19 : vector<8x128xi32>
    %21 = arith.select %18, %20, %9 : vector<8x128xi1>, vector<8x128xi32>
    %c2_i32 = arith.constant 2 : i32
    %22 = vector.broadcast %c2_i32 : i32 to vector<8x128xi32>
    %23 = arith.muli %21, %22 : vector<8x128xi32>
    %24 = arith.addi %4, %23 : vector<8x128xi32>
    %25 = arith.sitofp %24 : vector<8x128xi32> to vector<8x128xf32>
    %26 = arith.mulf %25, %0 : vector<8x128xf32>
    %cst = arith.constant 0.00999999977 : f32
    %27 = vector.broadcast %cst : f32 to vector<8x128xf32>
    %28 = arith.mulf %26, %27 : vector<8x128xf32>
    %c11 = arith.constant 11 : index
    %29 = memref.load %arg1[%c11] : memref<12xf32, #tpu.memory_space<smem>>
    %30 = vector.broadcast %29 : f32 to vector<8x128xf32>
    %31 = arith.mulf %0, %30 : vector<8x128xf32>
    %c8 = arith.constant 8 : index
    %32 = memref.load %arg1[%c8] : memref<12xf32, #tpu.memory_space<smem>>
    %c9 = arith.constant 9 : index
    %33 = memref.load %arg1[%c9] : memref<12xf32, #tpu.memory_space<smem>>
    %c10 = arith.constant 10 : index
    %34 = memref.load %arg1[%c10] : memref<12xf32, #tpu.memory_space<smem>>
    %35 = vector.broadcast %34 : f32 to vector<8x128xf32>
    %36 = arith.mulf %28, %35 : vector<8x128xf32>
    %37 = vector.broadcast %33 : f32 to vector<8x128xf32>
    %38 = arith.addf %37, %36 : vector<8x128xf32>
    %39 = arith.mulf %28, %38 : vector<8x128xf32>
    %40 = vector.broadcast %32 : f32 to vector<8x128xf32>
    %41 = arith.addf %40, %39 : vector<8x128xf32>
    %42 = arith.mulf %28, %41 : vector<8x128xf32>
    %43 = arith.addf %31, %42 : vector<8x128xf32>
    %c0_4 = arith.constant 0 : index
    %c0_5 = arith.constant 0 : index
    %c0_6 = arith.constant 0 : index
    %44 = vector.load %arg2[%c0_4, %c0_5, %c0_6] : memref<4x8x128xf32, #tpu.memory_space<vmem>>, vector<1x8x128xf32>
    %45 = vector.shape_cast %44 : vector<1x8x128xf32> to vector<8x128xf32>
    %c0_7 = arith.constant 0 : index
    %46 = memref.load %arg1[%c0_7] : memref<12xf32, #tpu.memory_space<smem>>
    %c4 = arith.constant 4 : index
    %47 = memref.load %arg1[%c4] : memref<12xf32, #tpu.memory_space<smem>>
    %48 = vector.broadcast %47 : f32 to vector<8x128xf32>
    %49 = arith.mulf %45, %48 : vector<8x128xf32>
    %50 = vector.broadcast %46 : f32 to vector<8x128xf32>
    %51 = arith.addf %50, %49 : vector<8x128xf32>
    %52 = arith.mulf %45, %51 : vector<8x128xf32>
    %53 = arith.addf %43, %52 : vector<8x128xf32>
    %c1 = arith.constant 1 : index
    %c0_8 = arith.constant 0 : index
    %c0_9 = arith.constant 0 : index
    %54 = vector.load %arg2[%c1, %c0_8, %c0_9] : memref<4x8x128xf32, #tpu.memory_space<vmem>>, vector<1x8x128xf32>
    %55 = vector.shape_cast %54 : vector<1x8x128xf32> to vector<8x128xf32>
    %c1_10 = arith.constant 1 : index
    %56 = memref.load %arg1[%c1_10] : memref<12xf32, #tpu.memory_space<smem>>
    %c5 = arith.constant 5 : index
    %57 = memref.load %arg1[%c5] : memref<12xf32, #tpu.memory_space<smem>>
    %58 = vector.broadcast %57 : f32 to vector<8x128xf32>
    %59 = arith.mulf %55, %58 : vector<8x128xf32>
    %60 = vector.broadcast %56 : f32 to vector<8x128xf32>
    %61 = arith.addf %60, %59 : vector<8x128xf32>
    %62 = arith.mulf %55, %61 : vector<8x128xf32>
    %63 = arith.addf %53, %62 : vector<8x128xf32>
    %c2 = arith.constant 2 : index
    %c0_11 = arith.constant 0 : index
    %c0_12 = arith.constant 0 : index
    %64 = vector.load %arg2[%c2, %c0_11, %c0_12] : memref<4x8x128xf32, #tpu.memory_space<vmem>>, vector<1x8x128xf32>
    %65 = vector.shape_cast %64 : vector<1x8x128xf32> to vector<8x128xf32>
    %c2_13 = arith.constant 2 : index
    %66 = memref.load %arg1[%c2_13] : memref<12xf32, #tpu.memory_space<smem>>
    %c6 = arith.constant 6 : index
    %67 = memref.load %arg1[%c6] : memref<12xf32, #tpu.memory_space<smem>>
    %68 = vector.broadcast %67 : f32 to vector<8x128xf32>
    %69 = arith.mulf %65, %68 : vector<8x128xf32>
    %70 = vector.broadcast %66 : f32 to vector<8x128xf32>
    %71 = arith.addf %70, %69 : vector<8x128xf32>
    %72 = arith.mulf %65, %71 : vector<8x128xf32>
    %73 = arith.addf %63, %72 : vector<8x128xf32>
    %c3 = arith.constant 3 : index
    %c0_14 = arith.constant 0 : index
    %c0_15 = arith.constant 0 : index
    %74 = vector.load %arg2[%c3, %c0_14, %c0_15] : memref<4x8x128xf32, #tpu.memory_space<vmem>>, vector<1x8x128xf32>
    %75 = vector.shape_cast %74 : vector<1x8x128xf32> to vector<8x128xf32>
    %c3_16 = arith.constant 3 : index
    %76 = memref.load %arg1[%c3_16] : memref<12xf32, #tpu.memory_space<smem>>
    %c7 = arith.constant 7 : index
    %77 = memref.load %arg1[%c7] : memref<12xf32, #tpu.memory_space<smem>>
    %78 = vector.broadcast %77 : f32 to vector<8x128xf32>
    %79 = arith.mulf %75, %78 : vector<8x128xf32>
    %80 = vector.broadcast %76 : f32 to vector<8x128xf32>
    %81 = arith.addf %80, %79 : vector<8x128xf32>
    %82 = arith.mulf %75, %81 : vector<8x128xf32>
    %83 = arith.addf %73, %82 : vector<8x128xf32>
    %c0_17 = arith.constant 0 : index
    %c0_18 = arith.constant 0 : index
    %84 = vector.load %arg4[%c0_17, %c0_18] : memref<8x128xf32, #tpu.memory_space<vmem>>, vector<8x128xf32>
    tpu.vector_store %arg4[%c0_17, %c0_18], %83 {strides = array<i32>} : memref<8x128xf32, #tpu.memory_space<vmem>>, vector<8x128xf32>,
    return
  }
  func.func @transform_0(%arg0: i32) -> i32 {
    %c0_i32 = arith.constant 0 : i32
    %c0_i32_0 = arith.constant 0 : i32
    return %c0_i32 : i32
  }
  func.func @transform_1(%arg0: i32) -> (i32, i32, i32) {
    %c0_i32 = arith.constant 0 : i32
    %c0_i32_0 = arith.constant 0 : i32
    %c0_i32_1 = arith.constant 0 : i32
    return %c0_i32, %c0_i32_0, %arg0 : i32, i32, i32
  }
  func.func @transform_2(%arg0: i32) -> (i32, i32) {
    %c0_i32 = arith.constant 0 : i32
    %c0_i32_0 = arith.constant 0 : i32
    return %c0_i32, %arg0 : i32, i32
  }
  func.func @transform_3(%arg0: i32) -> (i32, i32) {
    %c0_i32 = arith.constant 0 : i32
    %c0_i32_0 = arith.constant 0 : i32
    return %c0_i32, %arg0 : i32, i32
  }
}

</mosaic_0001>

<bundles_post_ra>
// kernel: tpu_custom_call.1
= control target key start
LH: loop header
LB: loop body
LE: loop exit
PB: predicated region body
PF: predicated region fallthrough
CT: control target
= control target key end

     0   :  { %8 = vsyncpa [#allocation3], 0  ;;  %s186_s0 = inlined_call_operand.vmem [shape: f32[12], index: 0, kind: input, shape index: {}]   ;;  %s187_s1 = inlined_call_operand.vmem [shape: f32[4,8,2], index: 1, kind: input, shape index: {}]   ;;  %s188_s2 = inlined_call_operand.vmem [shape: f32[8,2], index: 2, kind: input, shape index: {}]   ;;  %s189_s3 = inlined_call_operand.vmem [shape: f32[8,2], index: 3, kind: output, shape index: {}]  }
   0x1   :  { %s15_s14 = sshll.u32 %s186_s0, 4  ;;  %s16_s14 = int_to_ptr.vmem [resolvable:$true] %s15_s14 }
   0x2   :  { %s127_s15 = scalar_lea.vmem %s16_s14, 16  ;;  %p132_p1 = scmp.lt.s32.totalorder %s16_s14, %s16_s14 }
   0x3   :  { %p128_p0 = scmp.ne.s32.totalorder %s16_s14, %s127_s15  ;;  %p133_p2 = scmp.lt.s32.totalorder %s127_s15, %s127_s15 }
   0x5   :  { %p134_p3 = por %p133_p2, %p132_p1 }
   0x7   :  { %p135_p4 = pnand %p134_p3, %p128_p0 }
   0x9   :  { %138 = shalt.err (!%p135_p4)
}
   0xa   :  { %s141_s16 = smov [#allocation2]  }
   0xb   :  { %18 = dma.vmem_to_smem %s16_s14, 16, %s141_s16, [#allocation3]  }
   0xc   :  { %139 = dma.done.wait [#allocation3], 16  }
   0xd   :  { %140 = vsyncadd [#allocation3], 4294967280 }
   0xe   :  { %26 = sfence }
   0xf   :  { %v29_v0 = vlaneseq  ;;  %s115_s17 = sld [smem:[#allocation2 + $0xa]]  ;;  %s116_s18 = sld [smem:[#allocation2 + $0x4]]  ;;  %v27_v6 = vld [vmem:[%s188_s2] sm:$0xff]  ;;  %v117_v14 = vld [vmem:[%s187_s1 + $0x8] sm:$0xff]  ;;  %v120_v19 = vld [vmem:[%s187_s1 + $0x10] sm:$0xff] }
  0x10   :  { %s114_s0 = sld [smem:[#allocation2 + $0x9]]  ;;  %s119_s19 = sld [smem:[#allocation2 + $0x5]]  ;;  %v67_v10 = vld [vmem:[%s187_s1] sm:$0xff]  ;;  %v123_v23 = vld [vmem:[%s187_s1 + $0x18] sm:$0xff] }
  0x11   :  { %v34_v1 = vshrl.u32 %v29_v0, 7  ;;  %v30_v2 = vand.u32 127, %v29_v0  ;;  %s68_s22 = sld [smem:[#allocation2]]  ;;  %s122_s23 = sld [smem:[#allocation2 + $0x6]] }
  0x12   :  { %s168_s24 = sld [smem:[#allocation2 + $0xb]]  ;;  %s113_s25 = sld [smem:[#allocation2 + $0x8]] }
  0x13   :  { %v39_v3 = vand.u32 3, %v34_v1  ;;  %s118_s26 = sld [smem:[#allocation2 + $0x1]]  ;;  %s125_s27 = sld [smem:[#allocation2 + $0x7]] }
  0x14   :  { %s121_s30 = sld [smem:[#allocation2 + $0x2]]  ;;  %s124_s5 = sld [smem:[#allocation2 + $0x3]] }
  0x15   :  { %v47_v4 = vmul.u32 2, %v39_v3  ;;  %v58_v9 = vstv %s115_s17  ;;  %v70_v11 = vstv %s116_s18 }
  0x16   :  { %v60_v13 = vstv %s114_s0  ;;  %v80_v15 = vstv %s119_s19  ;;  %v71_v17 = vmul.f32 %v70_v11, %v67_v10 }
  0x17   :  { %v48_v5 = vadd.s32 %v47_v4, %v30_v2  ;;  %v72_v18 = vstv %s68_s22  ;;  %v90_v20 = vstv %s122_s23  ;;  %v81_v22 = vmul.f32 %v117_v14, %v80_v15 }
  0x18   :  { %v53_v24 = vstv %s168_s24  ;;  %v63_v25 = vstv %s113_s25  ;;  %v73_v29 = vadd.f32 %v72_v18, %v71_v17  ;;  %v91_v30 = vmul.f32 %v120_v19, %v90_v20 }
  0x19   :  { %v49_v7 = vcvt.s32.f32 %v48_v5  ;;  %v82_v26 = vstv %s118_s26  ;;  %v100_v27 = vstv %s125_s27  ;;  %v54_v32 = vmul.f32 %v53_v24, %v27_v6 }
  0x1a   :  { %v92_v31 = vstv %s121_s30  ;;  %v83_v34 = vadd.f32 %v82_v26, %v81_v22  ;;  %v101_v35 = vmul.f32 %v123_v23, %v100_v27  ;;  %v102_v36 = vstv %s124_s5 }
  0x1b   :  { %v50_v8 = vmul.f32 %v49_v7, %v27_v6  ;;  %v74_v38 = vmul.f32 %v73_v29, %v67_v10  ;;  %v93_v39 = vadd.f32 %v92_v31, %v91_v30 }
  0x1c   :  { %v84_v41 = vmul.f32 %v117_v14, %v83_v34  ;;  %v103_v42 = vadd.f32 %v102_v36, %v101_v35 }
  0x1d   :  { %v51_v12 = vmul.f32 0.01, %v50_v8  ;;  %v94_v44 = vmul.f32 %v120_v19, %v93_v39 }
  0x1e   :  { %v104_v46 = vmul.f32 %v123_v23, %v103_v42 }
  0x1f   :  { %v59_v16 = vmul.f32 %v58_v9, %v51_v12 }
  0x21   :  { %v61_v21 = vadd.f32 %v60_v13, %v59_v16 }
  0x23   :  { %v62_v28 = vmul.f32 %v61_v21, %v51_v12 }
  0x25   :  { %v64_v33 = vadd.f32 %v63_v25, %v62_v28 }
  0x27   :  { %v65_v37 = vmul.f32 %v64_v33, %v51_v12 }
  0x29   :  { %v66_v40 = vadd.f32 %v65_v37, %v54_v32 }
  0x2b   :  { %v75_v43 = vadd.f32 %v74_v38, %v66_v40 }
  0x2d   :  { %v85_v45 = vadd.f32 %v84_v41, %v75_v43 }
  0x2f   :  { %v95_v47 = vadd.f32 %v94_v44, %v85_v45 }
  0x31   :  { %v105_v48 = vadd.f32 %v104_v46, %v95_v47 }
  0x33   :  { %106 = vst [vmem:[%s189_s3] sm:$0xff] %v105_v48 }
  0x34   :  { %111 = vsyncpa [#allocation3], 1 }

</bundles_post_ra>
